<compile_context>
chip_gen: v7x
topology: tpu7x:2x2x1
jax: 0.10.0
libtpu: 0.0.40
codegen_flags: <defaults>
</compile_context>

<pallas_src>
import jax
import jax.numpy as jnp
from jax.experimental import pallas as pl
from jax.experimental.pallas import tpu as pltpu

OUT_PAD = 128  # lane-dense padded width for the 19-wide fc3 output


def mlp_head_kernel(x_ref, w1_ref, b1_ref, w2_ref, b2_ref, w3_ref, b3_ref, o_ref):
    # x arrives f32; cast to bf16 on the VPU (free slot under the MXU) so the
    # wrapper never needs a separate HBM pass to cast x.
    x = x_ref[...].astype(jnp.bfloat16)                               # [TB, 1000]
    h1 = jnp.dot(x, w1_ref[...], preferred_element_type=jnp.float32)
    h1 = jnp.maximum(h1 + b1_ref[...], 0.0)                           # relu(fc1), f32
    h2 = jnp.dot(h1.astype(jnp.bfloat16), w2_ref[...],
                 preferred_element_type=jnp.float32)
    h2 = jnp.maximum(h2 + b2_ref[...], 0.0)                           # relu(fc2), f32
    h3 = jnp.dot(h2.astype(jnp.bfloat16), w3_ref[...],
                 preferred_element_type=jnp.float32)
    o_ref[...] = (h3 + b3_ref[...]).astype(o_ref.dtype)               # fc3 (padded), bf16


def _round_up(n, m):
    return -(-n // m) * m


def _pick_tb(B, tb_max):
    """Sublane-aligned batch tile; >=2 grid steps when B >= 16 (v7x megacore)."""
    B8 = _round_up(B, 8)
    if B >= 16:
        tb = min(tb_max, _round_up(-(-B8 // 2), 8))
    else:
        tb = min(tb_max, B8)
    return max(tb, 8)


def prepare_head_params(w1, b1, w2, b2, w3, b3):
    """One-time preprocessing (call once, reuse across forward calls):
       bf16 weights for the MXU (biases stay f32 for the f32 epilogue) and fc3
       output padded 19 -> 128 lanes for lane-dense, unmasked stores."""
    out_dim = w3.shape[1]
    w3p = jnp.zeros((w3.shape[0], OUT_PAD), w3.dtype).at[:, :out_dim].set(w3)
    b3p = jnp.zeros((1, OUT_PAD), b3.dtype).at[:, :out_dim].set(b3)
    return (w1.astype(jnp.bfloat16), b1.astype(jnp.float32),
            w2.astype(jnp.bfloat16), b2.astype(jnp.float32),
            w3p.astype(jnp.bfloat16), b3p.astype(jnp.float32), out_dim)


def model1_head(x, params, *, tb=1024):
    """x: [B, 1000] float32 (EfficientNet-b3 features). Returns [B, 19] float32."""
    w1, b1, w2, b2, w3p, b3p, out_dim = params
    B, F = x.shape

    TB = _pick_tb(B, tb)
    B_pad = _round_up(B, TB)
    if B_pad != B:
        x = jnp.pad(x, ((0, B_pad - B), (0, 0)))
    grid = (B_pad // TB,)

    # Weights/biases use a constant index_map -> stay VMEM-resident across steps.
    resident = lambda shape: pl.BlockSpec(shape, lambda i: (0, 0))

    out = pl.pallas_call(
        mlp_head_kernel,
        out_shape=jax.ShapeDtypeStruct((B_pad, OUT_PAD), jnp.bfloat16),
        grid=grid,
        in_specs=[
            pl.BlockSpec((TB, F), lambda i: (i, 0)),   # x tile (f32, cast in-kernel)
            resident(w1.shape), resident(b1.shape),
            resident(w2.shape), resident(b2.shape),
            resident(w3p.shape), resident(b3p.shape),
        ],
        out_specs=pl.BlockSpec((TB, OUT_PAD), lambda i: (i, 0)),
        compiler_params=pltpu.CompilerParams(
            dimension_semantics=("parallel",),
            vmem_limit_bytes=32 << 20,
        ),
    )(x, w1, b1, w2, b2, w3p, b3p)

    return out[:B, :out_dim].astype(jnp.float32)


def init_linear(key, in_dim, out_dim):
    """Deterministic init mimicking nn.Linear's uniform(-1/sqrt(in), 1/sqrt(in))."""
    kw, kb = jax.random.split(key)
    bound = 1.0 / jnp.sqrt(jnp.float32(in_dim))
    # Stored directly as [in, out] (i.e. W.T of PyTorch's [out, in] weight).
    w = jax.random.uniform(kw, (in_dim, out_dim), jnp.float32, -bound, bound)
    b = jax.random.uniform(kb, (1, out_dim), jnp.float32, -bound, bound)
    return w, b


if __name__ == "__main__":
    key = jax.random.PRNGKey(0)
    k_x, k1, k2, k3 = jax.random.split(key, 4)

    B = 4
    # Backbone (EfficientNet-b3) output features: [B, 1000]
    x = jax.random.normal(k_x, (B, 1000), jnp.float32)

    w1, b1 = init_linear(k1, 1000, 512)
    w2, b2 = init_linear(k2, 512, 128)
    w3, b3 = init_linear(k3, 128, 19)

    params = prepare_head_params(w1, b1, w2, b2, w3, b3)
    out = model1_head(x, params)
    out = jax.block_until_ready(out)

    # Pure-JAX reference with matching matmul numerics (bf16 inputs, f32 accum).
    w1b, w2b, w3b = (w.astype(jnp.bfloat16) for w in (w1, w2, w3))
    h1 = jnp.maximum(
        jnp.dot(x.astype(jnp.bfloat16), w1b, preferred_element_type=jnp.float32) + b1, 0.0)
    h2 = jnp.maximum(
        jnp.dot(h1.astype(jnp.bfloat16), w2b, preferred_element_type=jnp.float32) + b2, 0.0)
    ref = jnp.dot(h2.astype(jnp.bfloat16), w3b, preferred_element_type=jnp.float32) + b3

    assert out.shape == (B, 19)
    assert jnp.allclose(out, ref, atol=2e-2, rtol=2e-2)

    print("KERNEL_OK")
</pallas_src>

<mosaic_0001>
module attributes {stable_mosaic.version = 11 : i64} {
  func.func @mlp_head_kernel(%arg0: i32, %arg1: memref<8x1000xf32, #tpu.memory_space<vmem>>, %arg2: memref<1000x512xbf16, #tpu.memory_space<vmem>>, %arg3: memref<1x512xf32, #tpu.memory_space<vmem>>, %arg4: memref<512x128xbf16, #tpu.memory_space<vmem>>, %arg5: memref<1x128xf32, #tpu.memory_space<vmem>>, %arg6: memref<128x128xbf16, #tpu.memory_space<vmem>>, %arg7: memref<1x128xf32, #tpu.memory_space<vmem>>, %arg8: memref<8x128xbf16, #tpu.memory_space<vmem>>) attributes {dimension_semantics = [#tpu.dimension_semantics<parallel>], iteration_bounds = array<i64: 1>, scalar_prefetch = 0 : i64, scratch_operands = 0 : i64, tpu.core_type = #tpu.core_type<tc>, window_params = [{transform_indices = @transform_0, window_bounds = array<i64: 8, 1000>}, {pipeline_mode = #tpu.pipeline_mode<synchronous>, transform_indices = @transform_1, window_bounds = array<i64: 1000, 512>}, {pipeline_mode = #tpu.pipeline_mode<synchronous>, transform_indices = @transform_2, window_bounds = array<i64: 1, 512>}, {pipeline_mode = #tpu.pipeline_mode<synchronous>, transform_indices = @transform_3, window_bounds = array<i64: 512, 128>}, {pipeline_mode = #tpu.pipeline_mode<synchronous>, transform_indices = @transform_4, window_bounds = array<i64: 1, 128>}, {pipeline_mode = #tpu.pipeline_mode<synchronous>, transform_indices = @transform_5, window_bounds = array<i64: 128, 128>}, {pipeline_mode = #tpu.pipeline_mode<synchronous>, transform_indices = @transform_6, window_bounds = array<i64: 1, 128>}, {transform_indices = @transform_7, window_bounds = array<i64: 8, 128>}]} {
    %c0 = arith.constant 0 : index
    %c0_0 = arith.constant 0 : index
    %0 = vector.load %arg1[%c0, %c0_0] : memref<8x1000xf32, #tpu.memory_space<vmem>>, vector<8x1000xf32>
    %1 = arith.truncf %0 : vector<8x1000xf32> to vector<8x1000xbf16>
    %c0_1 = arith.constant 0 : index
    %c0_2 = arith.constant 0 : index
    %2 = vector.load %arg2[%c0_1, %c0_2] : memref<1000x512xbf16, #tpu.memory_space<vmem>>, vector<1000x512xbf16>
    %cst = arith.constant dense<0.000000e+00> : vector<8x512xf32>
    %3 = tpu.matmul %1, %2, %cst {dimension_numbers = #tpu.dot_dimension_numbers<[1], [0], [0], [1], [0, 0, 1, 1], [], []>} : vector<8x1000xbf16>, vector<1000x512xbf16>, vector<8x512xf32> -> vector<8x512xf32>
    %c0_3 = arith.constant 0 : index
    %c0_4 = arith.constant 0 : index
    %4 = vector.load %arg3[%c0_3, %c0_4] : memref<1x512xf32, #tpu.memory_space<vmem>>, vector<1x512xf32>
    %5 = vector.broadcast %4 : vector<1x512xf32> to vector<8x512xf32>
    %6 = arith.addf %3, %5 : vector<8x512xf32>
    %cst_5 = arith.constant 0.000000e+00 : f32
    %7 = vector.broadcast %cst_5 : f32 to vector<8x512xf32>
    %8 = arith.maximumf %6, %7 : vector<8x512xf32>
    %9 = arith.truncf %8 : vector<8x512xf32> to vector<8x512xbf16>
    %c0_6 = arith.constant 0 : index
    %c0_7 = arith.constant 0 : index
    %10 = vector.load %arg4[%c0_6, %c0_7] : memref<512x128xbf16, #tpu.memory_space<vmem>>, vector<512x128xbf16>
    %cst_8 = arith.constant dense<0.000000e+00> : vector<8x128xf32>
    %11 = tpu.matmul %9, %10, %cst_8 {dimension_numbers = #tpu.dot_dimension_numbers<[1], [0], [0], [1], [0, 0, 1, 1], [], []>} : vector<8x512xbf16>, vector<512x128xbf16>, vector<8x128xf32> -> vector<8x128xf32>
    %c0_9 = arith.constant 0 : index
    %c0_10 = arith.constant 0 : index
    %12 = vector.load %arg5[%c0_9, %c0_10] : memref<1x128xf32, #tpu.memory_space<vmem>>, vector<1x128xf32>
    %13 = vector.broadcast %12 : vector<1x128xf32> to vector<8x128xf32>
    %14 = arith.addf %11, %13 : vector<8x128xf32>
    %cst_11 = arith.constant 0.000000e+00 : f32
    %15 = vector.broadcast %cst_11 : f32 to vector<8x128xf32>
    %16 = arith.maximumf %14, %15 : vector<8x128xf32>
    %17 = arith.truncf %16 : vector<8x128xf32> to vector<8x128xbf16>
    %c0_12 = arith.constant 0 : index
    %c0_13 = arith.constant 0 : index
    %18 = vector.load %arg6[%c0_12, %c0_13] : memref<128x128xbf16, #tpu.memory_space<vmem>>, vector<128x128xbf16>
    %cst_14 = arith.constant dense<0.000000e+00> : vector<8x128xf32>
    %19 = tpu.matmul %17, %18, %cst_14 {dimension_numbers = #tpu.dot_dimension_numbers<[1], [0], [0], [1], [0, 0, 1, 1], [], []>} : vector<8x128xbf16>, vector<128x128xbf16>, vector<8x128xf32> -> vector<8x128xf32>
    %c0_15 = arith.constant 0 : index
    %c0_16 = arith.constant 0 : index
    %20 = vector.load %arg7[%c0_15, %c0_16] : memref<1x128xf32, #tpu.memory_space<vmem>>, vector<1x128xf32>
    %21 = vector.broadcast %20 : vector<1x128xf32> to vector<8x128xf32>
    %22 = arith.addf %19, %21 : vector<8x128xf32>
    %23 = arith.truncf %22 : vector<8x128xf32> to vector<8x128xbf16>
    %c0_17 = arith.constant 0 : index
    %c0_18 = arith.constant 0 : index
    %24 = vector.load %arg8[%c0_17, %c0_18] : memref<8x128xbf16, #tpu.memory_space<vmem>>, vector<8x128xbf16>
    tpu.vector_store %arg8[%c0_17, %c0_18], %23 {strides = array<i32>} : memref<8x128xbf16, #tpu.memory_space<vmem>>, vector<8x128xbf16>,
    return
  }
  func.func @transform_0(%arg0: i32) -> (i32, i32) {
    %c0_i32 = arith.constant 0 : i32
    %c0_i32_0 = arith.constant 0 : i32
    return %arg0, %c0_i32 : i32, i32
  }
  func.func @transform_1(%arg0: i32) -> (i32, i32) {
    %c0_i32 = arith.constant 0 : i32
    %c0_i32_0 = arith.constant 0 : i32
    %c0_i32_1 = arith.constant 0 : i32
    return %c0_i32, %c0_i32_0 : i32, i32
  }
  func.func @transform_2(%arg0: i32) -> (i32, i32) {
    %c0_i32 = arith.constant 0 : i32
    %c0_i32_0 = arith.constant 0 : i32
    %c0_i32_1 = arith.constant 0 : i32
    return %c0_i32, %c0_i32_0 : i32, i32
  }
  func.func @transform_3(%arg0: i32) -> (i32, i32) {
    %c0_i32 = arith.constant 0 : i32
    %c0_i32_0 = arith.constant 0 : i32
    %c0_i32_1 = arith.constant 0 : i32
    return %c0_i32, %c0_i32_0 : i32, i32
  }
  func.func @transform_4(%arg0: i32) -> (i32, i32) {
    %c0_i32 = arith.constant 0 : i32
    %c0_i32_0 = arith.constant 0 : i32
    %c0_i32_1 = arith.constant 0 : i32
    return %c0_i32, %c0_i32_0 : i32, i32
  }
  func.func @transform_5(%arg0: i32) -> (i32, i32) {
    %c0_i32 = arith.constant 0 : i32
    %c0_i32_0 = arith.constant 0 : i32
    %c0_i32_1 = arith.constant 0 : i32
    return %c0_i32, %c0_i32_0 : i32, i32
  }
  func.func @transform_6(%arg0: i32) -> (i32, i32) {
    %c0_i32 = arith.constant 0 : i32
    %c0_i32_0 = arith.constant 0 : i32
    %c0_i32_1 = arith.constant 0 : i32
    return %c0_i32, %c0_i32_0 : i32, i32
  }
  func.func @transform_7(%arg0: i32) -> (i32, i32) {
    %c0_i32 = arith.constant 0 : i32
    %c0_i32_0 = arith.constant 0 : i32
    return %arg0, %c0_i32 : i32, i32
  }
}

</mosaic_0001>

<bundles_post_ra>
// kernel: tpu_custom_call.1
= control target key start
LH: loop header
LB: loop body
LE: loop exit
PB: predicated region body
PF: predicated region fallthrough
CT: control target
= control target key end

     0   :  { %12 = vsyncpa [#allocation3], 0  ;;  %s3513_s0 = inlined_call_operand.hbm [shape: f32[8,1000], index: 0, kind: input, shape index: {}]   ;;  %s3514_s1 = inlined_call_operand.hbm [shape: bf16[1000,512], index: 1, kind: input, shape index: {}]   ;;  %s3515_s2 = inlined_call_operand.vmem [shape: f32[1,512], index: 2, kind: input, shape index: {}]   ;;  %s3516_s3 = inlined_call_operand.hbm [shape: bf16[512,128], index: 3, kind: input, shape index: {}]   ;;  %s3517_s4 = inlined_call_operand.vmem [shape: f32[1,128], index: 4, kind: input, shape index: {}]   ;;  %s3518_s5 = inlined_call_operand.hbm [shape: bf16[128,128], index: 5, kind: input, shape index: {}]   ;;  %s3519_s6 = inlined_call_operand.vmem [shape: f32[1,128], index: 6, kind: input, shape index: {}]   ;;  %s3520_s7 = inlined_call_operand.hbm [shape: bf16[8,128], index: 7, kind: output, shape index: {}]  }
   0x1   :  { %13 = vsyncpa [#allocation6], 0 }
   0x2   :  { %14 = vsyncpa [#allocation9], 0 }
   0x3   :  { %15 = vsyncpa [#allocation4], 0  ;;  %s3391_s24 = smov [#allocation5]   ;;  %s3273_s28 = scalar_lea.hbm %s3514_s1, 32000 }
   0x4   :  { %s31_s25 = sshll.u32 %s3391_s24, 4  ;;  %p3274_p0 = scmp.ne.s32.totalorder %s3514_s1, %s3273_s28  ;;  %s32_s25 = int_to_ptr.vmem [resolvable:$true] %s31_s25 }
   0x5   :  { %p3277_p1 = scmp.lt.u32.totalorder %s3273_s28, %s3514_s1 }
   0x7   :  { %p3279_p2 = pnand %p3277_p1, %p3274_p0 }
   0x9   :  { %3282 = shalt.err (!%p3279_p2)
}
   0xa   :  { %s3283_s10 = scalar_lea.vmem %s32_s25, 32000  ;;  %p3288_p4 = scmp.lt.s32.totalorder %s32_s25, %s32_s25 }
   0xb   :  { %p3284_p3 = scmp.ne.s32.totalorder %s32_s25, %s3283_s10  ;;  %p3289_p5 = scmp.lt.s32.totalorder %s3283_s10, %s3283_s10 }
   0xd   :  { %p3290_p6 = por %p3289_p5, %p3288_p4 }
   0xf   :  { %p3291_p7 = pnand %p3290_p6, %p3284_p3 }
  0x11   :  { %3294 = shalt.err (!%p3291_p7)
}
  0x12   :  { %s3392_s11 = smov 256   ;;  %s3393_s12 = smov 16  }
  0x13   :  { %37 = dma.hbm_to_vmem [thread:$0]  %s3514_s1, 32000, %s32_s25, [#allocation6], %s3392_s11, %s3392_s11, %s3393_s12  }
  0x14   :  { %s3394_s15 = smov [#allocation2]   ;;  %s3395_s17 = smov [#allocation7]  }
  0x15   :  { %s22_s16 = sshll.u32 %s3394_s15, 4  ;;  %s45_s18 = sshll.u32 %s3395_s17, 4  ;;  %s23_s16 = int_to_ptr.vmem [resolvable:$true] %s22_s16  ;;  %s46_s18 = int_to_ptr.vmem [resolvable:$true] %s45_s18 }
  0x16   :  { %s3295_s21 = scalar_lea.hbm %s3513_s0, 1024 }
  0x17   :  { %p3296_p8 = scmp.ne.s32.totalorder %s3513_s0, %s3295_s21  ;;  %p3299_p9 = scmp.lt.u32.totalorder %s3295_s21, %s3513_s0 }
  0x19   :  { %p3301_p10 = pnand %p3299_p9, %p3296_p8 }
  0x1b   :  { %3304 = shalt.err (!%p3301_p10)
}
  0x1c   :  { %s3305_s1 = scalar_lea.vmem %s23_s16, 1024  ;;  %p3310_p12 = scmp.lt.s32.totalorder %s23_s16, %s23_s16 }
  0x1d   :  { %p3306_p11 = scmp.ne.s32.totalorder %s23_s16, %s3305_s1  ;;  %p3311_p13 = scmp.lt.s32.totalorder %s3305_s1, %s3305_s1 }
  0x1f   :  { %p3312_p0 = por %p3311_p13, %p3310_p12 }
  0x21   :  { %p3313_p1 = pnand %p3312_p0, %p3306_p11 }
  0x23   :  { %3316 = shalt.err (!%p3313_p1)
}
  0x24   :  { %25 = dma.hbm_to_vmem [thread:$0]  %s3513_s0, 1024, %s23_s16, [#allocation3]  }
  0x25   :  { %s3317_s30 = scalar_lea.hbm %s3516_s3, 4096 }
  0x26   :  { %p3318_p2 = scmp.ne.s32.totalorder %s3516_s3, %s3317_s30  ;;  %p3321_p3 = scmp.lt.u32.totalorder %s3317_s30, %s3516_s3 }
  0x28   :  { %p3323_p4 = pnand %p3321_p3, %p3318_p2 }
  0x2a   :  { %3326 = shalt.err (!%p3323_p4)
}
  0x2b   :  { %s3327_s12 = scalar_lea.vmem %s46_s18, 4096  ;;  %p3332_p6 = scmp.lt.s32.totalorder %s46_s18, %s46_s18 }
  0x2c   :  { %p3328_p5 = scmp.ne.s32.totalorder %s46_s18, %s3327_s12  ;;  %p3333_p7 = scmp.lt.s32.totalorder %s3327_s12, %s3327_s12 }
  0x2e   :  { %p3334_p8 = por %p3333_p7, %p3332_p6 }
  0x30   :  { %p3335_p9 = pnand %p3334_p8, %p3328_p5 }
  0x32   :  { %3338 = shalt.err (!%p3335_p9)
}
  0x33   :  { %s3396_s0 = smov 64   ;;  %s3397_s13 = smov 4  }
  0x34   :  { %51 = dma.hbm_to_vmem [thread:$0]  %s3516_s3, 4096, %s46_s18, [#allocation6], %s3396_s0, %s3396_s0, %s3397_s13  }
  0x35   :  { %s3398_s16 = smov [#allocation8]   ;;  %s3339_s21 = scalar_lea.hbm %s3518_s5, 1024 }
  0x36   :  { %s59_s17 = sshll.u32 %s3398_s16, 4  ;;  %p3340_p10 = scmp.ne.s32.totalorder %s3518_s5, %s3339_s21  ;;  %s60_s17 = int_to_ptr.vmem [resolvable:$true] %s59_s17 }
  0x37   :  { %p3343_p11 = scmp.lt.u32.totalorder %s3339_s21, %s3518_s5 }
  0x39   :  { %p3345_p12 = pnand %p3343_p11, %p3340_p10 }
  0x3b   :  { %3348 = shalt.err (!%p3345_p12)
}
  0x3c   :  { %s3349_s1 = scalar_lea.vmem %s60_s17, 1024  ;;  %p3354_p0 = scmp.lt.s32.totalorder %s60_s17, %s60_s17 }
  0x3d   :  { %p3350_p13 = scmp.ne.s32.totalorder %s60_s17, %s3349_s1  ;;  %p3355_p1 = scmp.lt.s32.totalorder %s3349_s1, %s3349_s1 }
  0x3f   :  { %p3356_p2 = por %p3355_p1, %p3354_p0 }
  0x41   :  { %p3357_p3 = pnand %p3356_p2, %p3350_p13 }
  0x43   :  { %3360 = shalt.err (!%p3357_p3)
}
  0x44   :  { %65 = dma.hbm_to_vmem [thread:$0]  %s3518_s5, 1024, %s60_s17, [#allocation9], %s3396_s0, %s3396_s0, %s3397_s13  }
  0x45   :  { %3383 = dma.done.wait [#allocation3], 1024  }
  0x46   :  { %3384 = vsyncadd [#allocation3], 4294966272 }
  0x47   :  { %3385 = dma.done.wait [#allocation6], 36096  }
  0x48   :  { %3386 = vsyncadd [#allocation6], 4294931200 }
  0x49   :  { %3387 = dma.done.wait [#allocation9], 1024  }
  0x4a   :  { %3388 = vsyncadd [#allocation9], 4294966272  ;;  %v2857_v0 = vld [vmem:[#allocation5 + $0x4] ss:$16 sps:$4 sm:$0xff]   ;;  %v2859_v1 = vld [vmem:[#allocation5 + $0xc] ss:$16 sps:$4 sm:$0xff]  }
  0x4b   :  { %1636 = vmatprep.subr.bf16.mxu0 %v2857_v0  ;;  %v2861_v2 = vld [vmem:[#allocation5] ss:$16 sps:$4 sm:$0xff]   ;;  %v2862_v3 = vld [vmem:[#allocation5 + $0x8] ss:$16 sps:$4 sm:$0xff]   ;;  %1800 = vmatprep.subr.bf16.mxu1 %v2859_v1  ;;  %v2863_v4 = vld [vmem:[#allocation5 + $0x24] ss:$16 sps:$4 sm:$0xff]  }
  0x4c   :  { %1637 = vmatpush1.bf16.msra.mxu0 %v2861_v2  ;;  %1801 = vmatpush1.bf16.msra.mxu1 %v2862_v3  ;;  %v2865_v5 = vld [vmem:[#allocation5 + $0x2c] ss:$16 sps:$4 sm:$0xff]   ;;  %v2867_v6 = vld [vmem:[#allocation5 + $0x20] ss:$16 sps:$4 sm:$0xff]   ;;  %v2868_v7 = vld [vmem:[#allocation5 + $0x28] ss:$16 sps:$4 sm:$0xff]  }
  0x4d   :  { %1638 = vmatprep.subr.bf16.mxu0 %v2863_v4  ;;  %1802 = vmatprep.subr.bf16.mxu1 %v2865_v5  ;;  %v2869_v8 = vld [vmem:[#allocation5 + $0x44] ss:$16 sps:$4 sm:$0xff]   ;;  %v2871_v9 = vld [vmem:[#allocation5 + $0x4c] ss:$16 sps:$4 sm:$0xff]   ;;  %v2873_v10 = vld [vmem:[#allocation5 + $0x40] ss:$16 sps:$4 sm:$0xff]  }
  0x4e   :  { %v2874_v11 = vld [vmem:[#allocation5 + $0x48] ss:$16 sps:$4 sm:$0xff]   ;;  %v2875_v12 = vld [vmem:[#allocation5 + $0x64] ss:$16 sps:$4 sm:$0xff]   ;;  %v2877_v13 = vld [vmem:[#allocation5 + $0x6c] ss:$16 sps:$4 sm:$0xff]  }
  0x4f   :  { %v2879_v14 = vld [vmem:[#allocation5 + $0x60] ss:$16 sps:$4 sm:$0xff]   ;;  %v2880_v15 = vld [vmem:[#allocation5 + $0x68] ss:$16 sps:$4 sm:$0xff]   ;;  %v2881_v16 = vld [vmem:[#allocation5 + $0x84] ss:$16 sps:$4 sm:$0xff]  }
  0x50   :  { %1639 = vmatpush1.bf16.msra.mxu0 %v2867_v6  ;;  %1803 = vmatpush1.bf16.msra.mxu1 %v2868_v7  ;;  %v2883_v17 = vld [vmem:[#allocation5 + $0x8c] ss:$16 sps:$4 sm:$0xff]   ;;  %v2885_v18 = vld [vmem:[#allocation5 + $0x80] ss:$16 sps:$4 sm:$0xff]   ;;  %v2886_v19 = vld [vmem:[#allocation5 + $0x88] ss:$16 sps:$4 sm:$0xff]  }
  0x51   :  { %1640 = vmatprep.subr.bf16.mxu0 %v2869_v8  ;;  %1804 = vmatprep.subr.bf16.mxu1 %v2871_v9  ;;  %v2887_v20 = vld [vmem:[#allocation5 + $0xa4] ss:$16 sps:$4 sm:$0xff]   ;;  %v2889_v21 = vld [vmem:[#allocation5 + $0xac] ss:$16 sps:$4 sm:$0xff]   ;;  %v2891_v22 = vld [vmem:[#allocation5 + $0xa0] ss:$16 sps:$4 sm:$0xff]  }
  0x52   :  { %v2892_v23 = vld [vmem:[#allocation5 + $0xa8] ss:$16 sps:$4 sm:$0xff]   ;;  %v2893_v24 = vld [vmem:[#allocation5 + $0xc4] ss:$16 sps:$4 sm:$0xff]   ;;  %v2895_v25 = vld [vmem:[#allocation5 + $0xcc] ss:$16 sps:$4 sm:$0xff]  }
  0x53   :  { %v2897_v26 = vld [vmem:[#allocation5 + $0xc0] ss:$16 sps:$4 sm:$0xff]   ;;  %v2898_v27 = vld [vmem:[#allocation5 + $0xc8] ss:$16 sps:$4 sm:$0xff]   ;;  %v2899_v28 = vld [vmem:[#allocation5 + $0xe4] ss:$16 sps:$4 sm:$0xff]  }
  0x54   :  { %1641 = vmatpush1.bf16.msra.mxu0 %v2873_v10  ;;  %1805 = vmatpush1.bf16.msra.mxu1 %v2874_v11  ;;  %v2901_v29 = vld [vmem:[#allocation5 + $0xec] ss:$16 sps:$4 sm:$0xff]   ;;  %v2903_v30 = vld [vmem:[#allocation5 + $0xe0] ss:$16 sps:$4 sm:$0xff]   ;;  %v2904_v31 = vld [vmem:[#allocation5 + $0xe8] ss:$16 sps:$4 sm:$0xff]  }
  0x55   :  { %1642 = vmatprep.subr.bf16.mxu0 %v2875_v12  ;;  %1806 = vmatprep.subr.bf16.mxu1 %v2877_v13  ;;  %v2905_v32 = vld [vmem:[#allocation5 + $0x104] ss:$16 sps:$4 sm:$0xff]   ;;  %v2907_v33 = vld [vmem:[#allocation5 + $0x10c] ss:$16 sps:$4 sm:$0xff]   ;;  %v2909_v34 = vld [vmem:[#allocation5 + $0x100] ss:$16 sps:$4 sm:$0xff]  }
  0x56   :  { %v2910_v35 = vld [vmem:[#allocation5 + $0x108] ss:$16 sps:$4 sm:$0xff]   ;;  %v2911_v36 = vld [vmem:[#allocation5 + $0x124] ss:$16 sps:$4 sm:$0xff]   ;;  %v2913_v37 = vld [vmem:[#allocation5 + $0x12c] ss:$16 sps:$4 sm:$0xff]  }
  0x57   :  { %v2915_v38 = vld [vmem:[#allocation5 + $0x120] ss:$16 sps:$4 sm:$0xff]   ;;  %v2916_v39 = vld [vmem:[#allocation5 + $0x128] ss:$16 sps:$4 sm:$0xff]   ;;  %v2917_v40 = vld [vmem:[#allocation5 + $0x144] ss:$16 sps:$4 sm:$0xff]  }
  0x58   :  { %1643 = vmatpush1.bf16.msra.mxu0 %v2879_v14  ;;  %1807 = vmatpush1.bf16.msra.mxu1 %v2880_v15  ;;  %v2919_v41 = vld [vmem:[#allocation5 + $0x14c] ss:$16 sps:$4 sm:$0xff]   ;;  %v2921_v42 = vld [vmem:[#allocation5 + $0x140] ss:$16 sps:$4 sm:$0xff]   ;;  %v2922_v43 = vld [vmem:[#allocation5 + $0x148] ss:$16 sps:$4 sm:$0xff]  }
  0x59   :  { %1644 = vmatprep.subr.bf16.mxu0 %v2881_v16  ;;  %1808 = vmatprep.subr.bf16.mxu1 %v2883_v17  ;;  %v2923_v44 = vld [vmem:[#allocation5 + $0x164] ss:$16 sps:$4 sm:$0xff]   ;;  %v2925_v45 = vld [vmem:[#allocation5 + $0x16c] ss:$16 sps:$4 sm:$0xff]   ;;  %v2927_v47 = vld [vmem:[#allocation5 + $0x160] ss:$16 sps:$4 sm:$0xff]  }
  0x5a   :  { %v82_v46 = vld [vmem:[#allocation2 + $0x8] sm:$0xff]  ;;  %v2929_v50 = vld [vmem:[#allocation5 + $0x184] ss:$16 sps:$4 sm:$0xff]   ;;  %v2933_v52 = vld [vmem:[#allocation5 + $0x180] ss:$16 sps:$4 sm:$0xff]   ;;  %vm1619_vm0 = vcmask 850944  }
  0x5b   :  { %v90_v48 = vpack.c.bf16 %v82_v46, %v82_v46  ;;  %v2928_v49 = vld [vmem:[#allocation5 + $0x168] ss:$16 sps:$4 sm:$0xff]   ;;  %v2931_v51 = vld [vmem:[#allocation5 + $0x18c] ss:$16 sps:$4 sm:$0xff]   ;;  %v2935_v54 = vld [vmem:[#allocation5 + $0x1a4] ss:$16 sps:$4 sm:$0xff]  }
  0x5c   :  { %1645 = vmatpush1.bf16.msra.mxu0 %v2885_v18  ;;  %1809 = vmatpush1.bf16.msra.mxu1 %v2886_v19  ;;  %v2934_v53 = vld [vmem:[#allocation5 + $0x188] ss:$16 sps:$4 sm:$0xff]   ;;  %v2937_v55 = vld [vmem:[#allocation5 + $0x1ac] ss:$16 sps:$4 sm:$0xff]   ;;  %v2939_v56 = vld [vmem:[#allocation5 + $0x1a0] ss:$16 sps:$4 sm:$0xff]  }
  0x5d   :  { %1646 = vmatprep.subr.bf16.mxu0 %v2887_v20  ;;  %1810 = vmatprep.subr.bf16.mxu1 %v2889_v21  ;;  %v2940_v57 = vld [vmem:[#allocation5 + $0x1a8] ss:$16 sps:$4 sm:$0xff]   ;;  %v2941_v58 = vld [vmem:[#allocation5 + $0x1c4] ss:$16 sps:$4 sm:$0xff]   ;;  %v2943_v59 = vld [vmem:[#allocation5 + $0x1cc] ss:$16 sps:$4 sm:$0xff]  }
  0x5e   :  { %1668 = vmatprep.mubr.bf16.mxu0 %v90_v48  ;;  %1832 = vmatprep.mubr.bf16.mxu1 %v90_v48  ;;  %v2945_v60 = vld [vmem:[#allocation5 + $0x1c0] ss:$16 sps:$4 sm:$0xff]   ;;  %v2946_v61 = vld [vmem:[#allocation5 + $0x1c8] ss:$16 sps:$4 sm:$0xff]   ;;  %v2947_v62 = vld [vmem:[#allocation5 + $0x1e4] ss:$16 sps:$4 sm:$0xff]  }
  0x5f   :  { %v2949_v63 = vld [vmem:[#allocation5 + $0x1ec] ss:$16 sps:$4 sm:$0xff]   ;;  %v2951_v0 = vld [vmem:[#allocation5 + $0x1e0] ss:$16 sps:$4 sm:$0xff]   ;;  %v2952_v1 = vld [vmem:[#allocation5 + $0x1e8] ss:$16 sps:$4 sm:$0xff]  }
  0x60   :  { %1647 = vmatpush1.bf16.msra.mxu0 %v2891_v22  ;;  %1811 = vmatpush1.bf16.msra.mxu1 %v2892_v23  ;;  %v81_v2 = vld [vmem:[#allocation2] sm:$0xff]  ;;  %v2958_v4 = vld [vmem:[#allocation5 + $0x20c] ss:$16 sps:$4 sm:$0xff]   ;;  %v2956_v7 = vld [vmem:[#allocation5 + $0x208] ss:$16 sps:$4 sm:$0xff]   ;;  %vm1623_vm1 = vcmask 1043456  }
  0x61   :  { %1648 = vmatprep.subr.bf16.mxu0 %v2893_v24  ;;  %1812 = vmatprep.subr.bf16.mxu1 %v2895_v25  ;;  %v2955_v3 = vld [vmem:[#allocation5 + $0x204] ss:$16 sps:$4 sm:$0xff]   ;;  %v89_v5 = vpack.c.bf16 %v81_v2, %v81_v2  ;;  %v2953_v6 = vld [vmem:[#allocation5 + $0x200] ss:$16 sps:$4 sm:$0xff]   ;;  %v2964_v9 = vld [vmem:[#allocation5 + $0x22c] ss:$16 sps:$4 sm:$0xff]  }
  0x62   :  { %v2961_v8 = vld [vmem:[#allocation5 + $0x224] ss:$16 sps:$4 sm:$0xff]   ;;  %v2959_v10 = vld [vmem:[#allocation5 + $0x220] ss:$16 sps:$4 sm:$0xff]   ;;  %v2962_v11 = vld [vmem:[#allocation5 + $0x228] ss:$16 sps:$4 sm:$0xff]  }
  0x63   :  { %v2967_v12 = vld [vmem:[#allocation5 + $0x244] ss:$16 sps:$4 sm:$0xff]   ;;  %v2970_v13 = vld [vmem:[#allocation5 + $0x24c] ss:$16 sps:$4 sm:$0xff]   ;;  %v2965_v14 = vld [vmem:[#allocation5 + $0x240] ss:$16 sps:$4 sm:$0xff]  }
  0x64   :  { %1649 = vmatpush1.bf16.msra.mxu0 %v2897_v26  ;;  %1813 = vmatpush1.bf16.msra.mxu1 %v2898_v27  ;;  %v2968_v15 = vld [vmem:[#allocation5 + $0x248] ss:$16 sps:$4 sm:$0xff]   ;;  %v2973_v16 = vld [vmem:[#allocation5 + $0x264] ss:$16 sps:$4 sm:$0xff]   ;;  %v2976_v17 = vld [vmem:[#allocation5 + $0x26c] ss:$16 sps:$4 sm:$0xff]  }
  0x65   :  { %1650 = vmatprep.subr.bf16.mxu0 %v2899_v28  ;;  %1814 = vmatprep.subr.bf16.mxu1 %v2901_v29  ;;  %v2971_v18 = vld [vmem:[#allocation5 + $0x260] ss:$16 sps:$4 sm:$0xff]   ;;  %v2974_v19 = vld [vmem:[#allocation5 + $0x268] ss:$16 sps:$4 sm:$0xff]   ;;  %v2979_v20 = vld [vmem:[#allocation5 + $0x284] ss:$16 sps:$4 sm:$0xff]  }
  0x66   :  { %v2982_v21 = vld [vmem:[#allocation5 + $0x28c] ss:$16 sps:$4 sm:$0xff]   ;;  %v2977_v22 = vld [vmem:[#allocation5 + $0x280] ss:$16 sps:$4 sm:$0xff]   ;;  %v2980_v23 = vld [vmem:[#allocation5 + $0x288] ss:$16 sps:$4 sm:$0xff]  }
  0x67   :  { %v2985_v24 = vld [vmem:[#allocation5 + $0x2a4] ss:$16 sps:$4 sm:$0xff]   ;;  %v2988_v25 = vld [vmem:[#allocation5 + $0x2ac] ss:$16 sps:$4 sm:$0xff]   ;;  %v2983_v26 = vld [vmem:[#allocation5 + $0x2a0] ss:$16 sps:$4 sm:$0xff]  }
  0x68   :  { %1651 = vmatpush1.bf16.msra.mxu0 %v2903_v30  ;;  %1815 = vmatpush1.bf16.msra.mxu1 %v2904_v31  ;;  %v2986_v27 = vld [vmem:[#allocation5 + $0x2a8] ss:$16 sps:$4 sm:$0xff]   ;;  %v2991_v28 = vld [vmem:[#allocation5 + $0x2c4] ss:$16 sps:$4 sm:$0xff]   ;;  %v2994_v29 = vld [vmem:[#allocation5 + $0x2cc] ss:$16 sps:$4 sm:$0xff]  }
  0x69   :  { %1652 = vmatprep.subr.bf16.mxu0 %v2905_v32  ;;  %1816 = vmatprep.subr.bf16.mxu1 %v2907_v33  ;;  %v84_v30 = vld [vmem:[#allocation2 + $0x18] sm:$0xff]  ;;  %v2989_v31 = vld [vmem:[#allocation5 + $0x2c0] ss:$16 sps:$4 sm:$0xff]   ;;  %v3015_v46 = vld [vmem:[#allocation5 + $0x344] ss:$16 sps:$4 sm:$0xff]   ;;  %vm3400_vm2 = vmmov 0  }
  0x6a   :  { %v92_v32 = vpack.c.bf16 %v84_v30, %v84_v30  ;;  %v2992_v33 = vld [vmem:[#allocation5 + $0x2c8] ss:$16 sps:$4 sm:$0xff]   ;;  %v3013_v48 = vld [vmem:[#allocation5 + $0x340] ss:$16 sps:$4 sm:$0xff]   ;;  %v3045_v2 = vld [vmem:[#allocation5 + $0x3e4] ss:$16 sps:$4 sm:$0xff]  }
  0x6b   :  { %v3081_v30 = vld [vmem:[#allocation5 + $0x4a4] ss:$16 sps:$4 sm:$0xff]   ;;  %s3401_s30 = smov [#allocation10]  }
  0x6c   :  { %1653 = vmatpush1.bf16.msra.mxu0 %v2909_v34  ;;  %1817 = vmatpush1.bf16.msra.mxu1 %v2910_v35  ;;  %v2997_v34 = vld [vmem:[#allocation5 + $0x2e4] ss:$16 sps:$4 sm:$0xff]   ;;  %v3000_v35 = vld [vmem:[#allocation5 + $0x2ec] ss:$16 sps:$4 sm:$0xff]  }
  0x6d   :  { %1654 = vmatprep.subr.bf16.mxu0 %v2911_v36  ;;  %1818 = vmatprep.subr.bf16.mxu1 %v2913_v37  ;;  %v2995_v36 = vld [vmem:[#allocation5 + $0x2e0] ss:$16 sps:$4 sm:$0xff]   ;;  %v2998_v37 = vld [vmem:[#allocation5 + $0x2e8] ss:$16 sps:$4 sm:$0xff]  }
  0x70   :  { %1655 = vmatpush1.bf16.msra.mxu0 %v2915_v38  ;;  %1819 = vmatpush1.bf16.msra.mxu1 %v2916_v39  ;;  %v3003_v38 = vld [vmem:[#allocation5 + $0x304] ss:$16 sps:$4 sm:$0xff]   ;;  %v3006_v39 = vld [vmem:[#allocation5 + $0x30c] ss:$16 sps:$4 sm:$0xff]  }
  0x71   :  { %1656 = vmatprep.subr.bf16.mxu0 %v2917_v40  ;;  %1820 = vmatprep.subr.bf16.mxu1 %v2919_v41  ;;  %v3001_v40 = vld [vmem:[#allocation5 + $0x300] ss:$16 sps:$4 sm:$0xff]   ;;  %v3004_v41 = vld [vmem:[#allocation5 + $0x308] ss:$16 sps:$4 sm:$0xff]  }
  0x74   :  { %1657 = vmatpush1.bf16.msra.mxu0 %v2921_v42  ;;  %1821 = vmatpush1.bf16.msra.mxu1 %v2922_v43  ;;  %v3009_v42 = vld [vmem:[#allocation5 + $0x324] ss:$16 sps:$4 sm:$0xff]   ;;  %v3012_v43 = vld [vmem:[#allocation5 + $0x32c] ss:$16 sps:$4 sm:$0xff]  }
  0x75   :  { %1658 = vmatprep.subr.bf16.mxu0 %v2923_v44  ;;  %1822 = vmatprep.subr.bf16.mxu1 %v2925_v45  ;;  %v3007_v44 = vld [vmem:[#allocation5 + $0x320] ss:$16 sps:$4 sm:$0xff]   ;;  %v3010_v45 = vld [vmem:[#allocation5 + $0x328] ss:$16 sps:$4 sm:$0xff]  }
  0x78   :  { %1659 = vmatpush1.bf16.msra.mxu0 %v2927_v47  ;;  %1823 = vmatpush1.bf16.msra.mxu1 %v2928_v49  ;;  %v3018_v47 = vld [vmem:[#allocation5 + $0x34c] ss:$16 sps:$4 sm:$0xff]   ;;  %v3016_v49 = vld [vmem:[#allocation5 + $0x348] ss:$16 sps:$4 sm:$0xff]  }
  0x79   :  { %1660 = vmatprep.subr.bf16.mxu0 %v2929_v50  ;;  %1824 = vmatprep.subr.bf16.mxu1 %v2931_v51  ;;  %v3021_v50 = vld [vmem:[#allocation5 + $0x364] ss:$16 sps:$4 sm:$0xff]   ;;  %v3024_v51 = vld [vmem:[#allocation5 + $0x36c] ss:$16 sps:$4 sm:$0xff]  }
  0x7c   :  { %1661 = vmatpush1.bf16.msra.mxu0 %v2933_v52  ;;  %1825 = vmatpush1.bf16.msra.mxu1 %v2934_v53  ;;  %v3019_v52 = vld [vmem:[#allocation5 + $0x360] ss:$16 sps:$4 sm:$0xff]   ;;  %v3022_v53 = vld [vmem:[#allocation5 + $0x368] ss:$16 sps:$4 sm:$0xff]  }
  0x7d   :  { %1662 = vmatprep.subr.bf16.mxu0 %v2935_v54  ;;  %1826 = vmatprep.subr.bf16.mxu1 %v2937_v55  ;;  %v3027_v54 = vld [vmem:[#allocation5 + $0x384] ss:$16 sps:$4 sm:$0xff]   ;;  %v3030_v55 = vld [vmem:[#allocation5 + $0x38c] ss:$16 sps:$4 sm:$0xff]  }
  0x80   :  { %1663 = vmatpush1.bf16.msra.mxu0 %v2939_v56  ;;  %1827 = vmatpush1.bf16.msra.mxu1 %v2940_v57  ;;  %v3025_v56 = vld [vmem:[#allocation5 + $0x380] ss:$16 sps:$4 sm:$0xff]   ;;  %v3028_v57 = vld [vmem:[#allocation5 + $0x388] ss:$16 sps:$4 sm:$0xff]  }
  0x81   :  { %1664 = vmatprep.subr.bf16.mxu0 %v2941_v58  ;;  %1828 = vmatprep.subr.bf16.mxu1 %v2943_v59  ;;  %v3033_v58 = vld [vmem:[#allocation5 + $0x3a4] ss:$16 sps:$4 sm:$0xff]   ;;  %v3036_v59 = vld [vmem:[#allocation5 + $0x3ac] ss:$16 sps:$4 sm:$0xff]  }
  0x84   :  { %1665 = vmatpush1.bf16.msra.mxu0 %v2945_v60  ;;  %1829 = vmatpush1.bf16.msra.mxu1 %v2946_v61  ;;  %v3031_v60 = vld [vmem:[#allocation5 + $0x3a0] ss:$16 sps:$4 sm:$0xff]   ;;  %v3034_v61 = vld [vmem:[#allocation5 + $0x3a8] ss:$16 sps:$4 sm:$0xff]  }
  0x85   :  { %1666 = vmatprep.subr.bf16.mxu0 %v2947_v62  ;;  %1830 = vmatprep.subr.bf16.mxu1 %v2949_v63  ;;  %v3039_v62 = vld [vmem:[#allocation5 + $0x3c4] ss:$16 sps:$4 sm:$0xff]   ;;  %v3042_v63 = vld [vmem:[#allocation5 + $0x3cc] ss:$16 sps:$4 sm:$0xff]  }
  0x88   :  { %1667 = vmatpush1.bf16.msra.mxu0 %v2951_v0  ;;  %1831 = vmatpush1.bf16.msra.mxu1 %v2952_v1  ;;  %v3037_v0 = vld [vmem:[#allocation5 + $0x3c0] ss:$16 sps:$4 sm:$0xff]   ;;  %v3040_v1 = vld [vmem:[#allocation5 + $0x3c8] ss:$16 sps:$4 sm:$0xff]  }
  0x89   :  { %1677 = vmatprep.subr.bf16.mxu0 %v2955_v3  ;;  %1841 = vmatprep.subr.bf16.mxu1 %v2958_v4  ;;  %v3048_v3 = vld [vmem:[#allocation5 + $0x3ec] ss:$16 sps:$4 sm:$0xff]   ;;  %v3043_v4 = vld [vmem:[#allocation5 + $0x3e0] ss:$16 sps:$4 sm:$0xff]  }
  0x8b   :  { %1669 = vmatmul.mubr.bf16.vlgmr.msra.gmra.mrb[0].mxu0 %v89_v5  ;;  %1833 = vmatmul.mubr.bf16.vlgmr.msra.gmra.mrb[0].mxu1 %v89_v5  ;;  %v3046_v5 = vld [vmem:[#allocation5 + $0x3e8] ss:$16 sps:$4 sm:$0xff]  }
  0x8c   :  { %1678 = vmatpush1.bf16.msra.mxu0 %v2953_v6  ;;  %1842 = vmatpush1.bf16.msra.mxu1 %v2956_v7  ;;  %v3051_v6 = vld [vmem:[#allocation5 + $0x404] ss:$16 sps:$4 sm:$0xff]  }
  0x8d   :  { %1679 = vmatprep.subr.bf16.mxu0 %v2961_v8  ;;  %1843 = vmatprep.subr.bf16.mxu1 %v2964_v9  ;;  %v83_v7 = vld [vmem:[#allocation2 + $0x10] sm:$0xff]  ;;  %v3054_v8 = vld [vmem:[#allocation5 + $0x40c] ss:$16 sps:$4 sm:$0xff]  }
  0x8e   :  { %1709 = vmatprep.mubr.bf16.mxu0 %v92_v32  ;;  %1873 = vmatprep.mubr.bf16.mxu1 %v92_v32  ;;  %v3049_v9 = vld [vmem:[#allocation5 + $0x400] ss:$16 sps:$4 sm:$0xff]  }
  0x8f   :  { %v3079_v32 = vld [vmem:[#allocation5 + $0x4a0] ss:$16 sps:$4 sm:$0xff]  }
  0x90   :  { %1680 = vmatpush1.bf16.msra.mxu0 %v2959_v10  ;;  %1844 = vmatpush1.bf16.msra.mxu1 %v2962_v11  ;;  %v3052_v10 = vld [vmem:[#allocation5 + $0x408] ss:$16 sps:$4 sm:$0xff]   ;;  %v91_v11 = vpack.c.bf16 %v83_v7, %v83_v7  ;;  %v3144_v7 = vld [vmem:[#allocation5 + $0x5ec] ss:$16 sps:$4 sm:$0xff]  }
  0x91   :  { %1681 = vmatprep.subr.bf16.mxu0 %v2967_v12  ;;  %1845 = vmatprep.subr.bf16.mxu1 %v2970_v13  ;;  %v3057_v12 = vld [vmem:[#allocation5 + $0x424] ss:$16 sps:$4 sm:$0xff]   ;;  %v3060_v13 = vld [vmem:[#allocation5 + $0x42c] ss:$16 sps:$4 sm:$0xff]  }
  0x94   :  { %1682 = vmatpush1.bf16.msra.mxu0 %v2965_v14  ;;  %1846 = vmatpush1.bf16.msra.mxu1 %v2968_v15  ;;  %v86_v14 = vld [vmem:[#allocation2 + $0x28] sm:$0xff] }
  0x95   :  { %1683 = vmatprep.subr.bf16.mxu0 %v2973_v16  ;;  %1847 = vmatprep.subr.bf16.mxu1 %v2976_v17  ;;  %v94_v15 = vpack.c.bf16 %v86_v14, %v86_v14  ;;  %v3055_v16 = vld [vmem:[#allocation5 + $0x420] ss:$16 sps:$4 sm:$0xff]   ;;  %v3058_v17 = vld [vmem:[#allocation5 + $0x428] ss:$16 sps:$4 sm:$0xff]  }
  0x96   :  { %v3148_v14 = vld [vmem:[#allocation5 + $0x608] ss:$16 sps:$4 sm:$0xff]  }
  0x98   :  { %1684 = vmatpush1.bf16.msra.mxu0 %v2971_v18  ;;  %1848 = vmatpush1.bf16.msra.mxu1 %v2974_v19  ;;  %v3063_v18 = vld [vmem:[#allocation5 + $0x444] ss:$16 sps:$4 sm:$0xff]   ;;  %v3066_v19 = vld [vmem:[#allocation5 + $0x44c] ss:$16 sps:$4 sm:$0xff]  }
  0x99   :  { %1685 = vmatprep.subr.bf16.mxu0 %v2979_v20  ;;  %1849 = vmatprep.subr.bf16.mxu1 %v2982_v21  ;;  %v3061_v20 = vld [vmem:[#allocation5 + $0x440] ss:$16 sps:$4 sm:$0xff]   ;;  %v3064_v21 = vld [vmem:[#allocation5 + $0x448] ss:$16 sps:$4 sm:$0xff]  }
  0x9c   :  { %1686 = vmatpush1.bf16.msra.mxu0 %v2977_v22  ;;  %1850 = vmatpush1.bf16.msra.mxu1 %v2980_v23  ;;  %v3069_v22 = vld [vmem:[#allocation5 + $0x464] ss:$16 sps:$4 sm:$0xff]   ;;  %v3072_v23 = vld [vmem:[#allocation5 + $0x46c] ss:$16 sps:$4 sm:$0xff]  }
  0x9d   :  { %1687 = vmatprep.subr.bf16.mxu0 %v2985_v24  ;;  %1851 = vmatprep.subr.bf16.mxu1 %v2988_v25  ;;  %v3067_v24 = vld [vmem:[#allocation5 + $0x460] ss:$16 sps:$4 sm:$0xff]   ;;  %v3070_v25 = vld [vmem:[#allocation5 + $0x468] ss:$16 sps:$4 sm:$0xff]  }
  0xa0   :  { %1688 = vmatpush1.bf16.msra.mxu0 %v2983_v26  ;;  %1852 = vmatpush1.bf16.msra.mxu1 %v2986_v27  ;;  %v3075_v26 = vld [vmem:[#allocation5 + $0x484] ss:$16 sps:$4 sm:$0xff]   ;;  %v3078_v27 = vld [vmem:[#allocation5 + $0x48c] ss:$16 sps:$4 sm:$0xff]  }
  0xa1   :  { %1689 = vmatprep.subr.bf16.mxu0 %v2991_v28  ;;  %1853 = vmatprep.subr.bf16.mxu1 %v2994_v29  ;;  %v3073_v28 = vld [vmem:[#allocation5 + $0x480] ss:$16 sps:$4 sm:$0xff]   ;;  %v3076_v29 = vld [vmem:[#allocation5 + $0x488] ss:$16 sps:$4 sm:$0xff]  }
  0xa4   :  { %1690 = vmatpush1.bf16.msra.mxu0 %v2989_v31  ;;  %1854 = vmatpush1.bf16.msra.mxu1 %v2992_v33  ;;  %v3084_v31 = vld [vmem:[#allocation5 + $0x4ac] ss:$16 sps:$4 sm:$0xff]   ;;  %v3082_v33 = vld [vmem:[#allocation5 + $0x4a8] ss:$16 sps:$4 sm:$0xff]  }
  0xa5   :  { %1691 = vmatprep.subr.bf16.mxu0 %v2997_v34  ;;  %1855 = vmatprep.subr.bf16.mxu1 %v3000_v35  ;;  %v3087_v34 = vld [vmem:[#allocation5 + $0x4c4] ss:$16 sps:$4 sm:$0xff]   ;;  %v3090_v35 = vld [vmem:[#allocation5 + $0x4cc] ss:$16 sps:$4 sm:$0xff]  }
  0xa8   :  { %1692 = vmatpush1.bf16.msra.mxu0 %v2995_v36  ;;  %1856 = vmatpush1.bf16.msra.mxu1 %v2998_v37  ;;  %v3085_v36 = vld [vmem:[#allocation5 + $0x4c0] ss:$16 sps:$4 sm:$0xff]   ;;  %v3088_v37 = vld [vmem:[#allocation5 + $0x4c8] ss:$16 sps:$4 sm:$0xff]  }
  0xa9   :  { %1693 = vmatprep.subr.bf16.mxu0 %v3003_v38  ;;  %1857 = vmatprep.subr.bf16.mxu1 %v3006_v39  ;;  %v3093_v38 = vld [vmem:[#allocation5 + $0x4e4] ss:$16 sps:$4 sm:$0xff]   ;;  %v3096_v39 = vld [vmem:[#allocation5 + $0x4ec] ss:$16 sps:$4 sm:$0xff]  }
  0xac   :  { %1694 = vmatpush1.bf16.msra.mxu0 %v3001_v40  ;;  %1858 = vmatpush1.bf16.msra.mxu1 %v3004_v41  ;;  %v3091_v40 = vld [vmem:[#allocation5 + $0x4e0] ss:$16 sps:$4 sm:$0xff]   ;;  %v3094_v41 = vld [vmem:[#allocation5 + $0x4e8] ss:$16 sps:$4 sm:$0xff]  }
  0xad   :  { %1695 = vmatprep.subr.bf16.mxu0 %v3009_v42  ;;  %1859 = vmatprep.subr.bf16.mxu1 %v3012_v43  ;;  %v3099_v42 = vld [vmem:[#allocation5 + $0x504] ss:$16 sps:$4 sm:$0xff]   ;;  %v3102_v43 = vld [vmem:[#allocation5 + $0x50c] ss:$16 sps:$4 sm:$0xff]  }
  0xb0   :  { %1696 = vmatpush1.bf16.msra.mxu0 %v3007_v44  ;;  %1860 = vmatpush1.bf16.msra.mxu1 %v3010_v45  ;;  %v3097_v44 = vld [vmem:[#allocation5 + $0x500] ss:$16 sps:$4 sm:$0xff]   ;;  %v3100_v45 = vld [vmem:[#allocation5 + $0x508] ss:$16 sps:$4 sm:$0xff]  }
  0xb1   :  { %1697 = vmatprep.subr.bf16.mxu0 %v3015_v46  ;;  %1861 = vmatprep.subr.bf16.mxu1 %v3018_v47  ;;  %v3105_v46 = vld [vmem:[#allocation5 + $0x524] ss:$16 sps:$4 sm:$0xff]   ;;  %v3108_v47 = vld [vmem:[#allocation5 + $0x52c] ss:$16 sps:$4 sm:$0xff]  }
  0xb4   :  { %1698 = vmatpush1.bf16.msra.mxu0 %v3013_v48  ;;  %1862 = vmatpush1.bf16.msra.mxu1 %v3016_v49  ;;  %v3103_v48 = vld [vmem:[#allocation5 + $0x520] ss:$16 sps:$4 sm:$0xff]   ;;  %v3106_v49 = vld [vmem:[#allocation5 + $0x528] ss:$16 sps:$4 sm:$0xff]  }
  0xb5   :  { %1699 = vmatprep.subr.bf16.mxu0 %v3021_v50  ;;  %1863 = vmatprep.subr.bf16.mxu1 %v3024_v51  ;;  %v3111_v50 = vld [vmem:[#allocation5 + $0x544] ss:$16 sps:$4 sm:$0xff]   ;;  %v3114_v51 = vld [vmem:[#allocation5 + $0x54c] ss:$16 sps:$4 sm:$0xff]  }
  0xb8   :  { %1700 = vmatpush1.bf16.msra.mxu0 %v3019_v52  ;;  %1864 = vmatpush1.bf16.msra.mxu1 %v3022_v53  ;;  %v3109_v52 = vld [vmem:[#allocation5 + $0x540] ss:$16 sps:$4 sm:$0xff]   ;;  %v3112_v53 = vld [vmem:[#allocation5 + $0x548] ss:$16 sps:$4 sm:$0xff]  }
  0xb9   :  { %1701 = vmatprep.subr.bf16.mxu0 %v3027_v54  ;;  %1865 = vmatprep.subr.bf16.mxu1 %v3030_v55  ;;  %v3117_v54 = vld [vmem:[#allocation5 + $0x564] ss:$16 sps:$4 sm:$0xff]   ;;  %v3120_v55 = vld [vmem:[#allocation5 + $0x56c] ss:$16 sps:$4 sm:$0xff]  }
  0xbc   :  { %1702 = vmatpush1.bf16.msra.mxu0 %v3025_v56  ;;  %1866 = vmatpush1.bf16.msra.mxu1 %v3028_v57  ;;  %v3115_v56 = vld [vmem:[#allocation5 + $0x560] ss:$16 sps:$4 sm:$0xff]   ;;  %v3118_v57 = vld [vmem:[#allocation5 + $0x568] ss:$16 sps:$4 sm:$0xff]  }
  0xbd   :  { %1703 = vmatprep.subr.bf16.mxu0 %v3033_v58  ;;  %1867 = vmatprep.subr.bf16.mxu1 %v3036_v59  ;;  %v3123_v58 = vld [vmem:[#allocation5 + $0x584] ss:$16 sps:$4 sm:$0xff]   ;;  %v3126_v59 = vld [vmem:[#allocation5 + $0x58c] ss:$16 sps:$4 sm:$0xff]  }
  0xc0   :  { %1704 = vmatpush1.bf16.msra.mxu0 %v3031_v60  ;;  %1868 = vmatpush1.bf16.msra.mxu1 %v3034_v61  ;;  %v3121_v60 = vld [vmem:[#allocation5 + $0x580] ss:$16 sps:$4 sm:$0xff]   ;;  %v3124_v61 = vld [vmem:[#allocation5 + $0x588] ss:$16 sps:$4 sm:$0xff]  }
  0xc1   :  { %1705 = vmatprep.subr.bf16.mxu0 %v3039_v62  ;;  %1869 = vmatprep.subr.bf16.mxu1 %v3042_v63  ;;  %v3129_v62 = vld [vmem:[#allocation5 + $0x5a4] ss:$16 sps:$4 sm:$0xff]   ;;  %v3132_v63 = vld [vmem:[#allocation5 + $0x5ac] ss:$16 sps:$4 sm:$0xff]  }
  0xc4   :  { %1706 = vmatpush1.bf16.msra.mxu0 %v3037_v0  ;;  %1870 = vmatpush1.bf16.msra.mxu1 %v3040_v1  ;;  %v3127_v0 = vld [vmem:[#allocation5 + $0x5a0] ss:$16 sps:$4 sm:$0xff]   ;;  %v3130_v1 = vld [vmem:[#allocation5 + $0x5a8] ss:$16 sps:$4 sm:$0xff]  }
  0xc5   :  { %1707 = vmatprep.subr.bf16.mxu0 %v3045_v2  ;;  %1871 = vmatprep.subr.bf16.mxu1 %v3048_v3  ;;  %v3135_v2 = vld [vmem:[#allocation5 + $0x5c4] ss:$16 sps:$4 sm:$0xff]   ;;  %v3138_v3 = vld [vmem:[#allocation5 + $0x5cc] ss:$16 sps:$4 sm:$0xff]  }
  0xc8   :  { %1708 = vmatpush1.bf16.msra.mxu0 %v3043_v4  ;;  %1872 = vmatpush1.bf16.msra.mxu1 %v3046_v5  ;;  %v3133_v4 = vld [vmem:[#allocation5 + $0x5c0] ss:$16 sps:$4 sm:$0xff]   ;;  %v3136_v5 = vld [vmem:[#allocation5 + $0x5c8] ss:$16 sps:$4 sm:$0xff]  }
  0xc9   :  { %1718 = vmatprep.subr.bf16.mxu0 %v3051_v6  ;;  %1882 = vmatprep.subr.bf16.mxu1 %v3054_v8  ;;  %v3141_v6 = vld [vmem:[#allocation5 + $0x5e4] ss:$16 sps:$4 sm:$0xff]   ;;  %v3139_v8 = vld [vmem:[#allocation5 + $0x5e0] ss:$16 sps:$4 sm:$0xff]  }
  0xcb   :  { %1710 = vmatmul.mubr.bf16.vlgmr.msra.gmra.mrb[0].mxu0 %v91_v11  ;;  %1874 = vmatmul.mubr.bf16.vlgmr.msra.gmra.mrb[0].mxu1 %v91_v11  ;;  %v85_v11 = vld [vmem:[#allocation2 + $0x20] sm:$0xff] }
  0xcc   :  { %1719 = vmatpush1.bf16.msra.mxu0 %v3049_v9  ;;  %1883 = vmatpush1.bf16.msra.mxu1 %v3052_v10  ;;  %v3142_v9 = vld [vmem:[#allocation5 + $0x5e8] ss:$16 sps:$4 sm:$0xff]   ;;  %v3147_v10 = vld [vmem:[#allocation5 + $0x604] ss:$16 sps:$4 sm:$0xff]  }
  0xcd   :  { %1720 = vmatprep.subr.bf16.mxu0 %v3057_v12  ;;  %1884 = vmatprep.subr.bf16.mxu1 %v3060_v13  ;;  %v3150_v12 = vld [vmem:[#allocation5 + $0x60c] ss:$16 sps:$4 sm:$0xff]   ;;  %v3145_v13 = vld [vmem:[#allocation5 + $0x600] ss:$16 sps:$4 sm:$0xff]  }
  0xce   :  { %1750 = vmatprep.mubr.bf16.mxu0 %v94_v15  ;;  %1914 = vmatprep.mubr.bf16.mxu1 %v94_v15  ;;  %v93_v15 = vpack.c.bf16 %v85_v11, %v85_v11 }
  0xd0   :  { %1721 = vmatpush1.bf16.msra.mxu0 %v3055_v16  ;;  %1885 = vmatpush1.bf16.msra.mxu1 %v3058_v17  ;;  %v88_v16 = vld [vmem:[#allocation2 + $0x38] sm:$0xff]  ;;  %v3153_v17 = vld [vmem:[#allocation5 + $0x624] ss:$16 sps:$4 sm:$0xff]  }
  0xd1   :  { %1722 = vmatprep.subr.bf16.mxu0 %v3063_v18  ;;  %1886 = vmatprep.subr.bf16.mxu1 %v3066_v19  ;;  %v3156_v18 = vld [vmem:[#allocation5 + $0x62c] ss:$16 sps:$4 sm:$0xff]   ;;  %v3151_v19 = vld [vmem:[#allocation5 + $0x620] ss:$16 sps:$4 sm:$0xff]  }
  0xd4   :  { %1723 = vmatpush1.bf16.msra.mxu0 %v3061_v20  ;;  %1887 = vmatpush1.bf16.msra.mxu1 %v3064_v21  ;;  %v3154_v20 = vld [vmem:[#allocation5 + $0x628] ss:$16 sps:$4 sm:$0xff]   ;;  %v96_v21 = vpack.c.bf16 %v88_v16, %v88_v16  ;;  %v3234_v16 = vld [vmem:[#allocation7 + $0xc0] sm:$0xff]  }
  0xd5   :  { %1724 = vmatprep.subr.bf16.mxu0 %v3069_v22  ;;  %1888 = vmatprep.subr.bf16.mxu1 %v3072_v23  ;;  %v3159_v22 = vld [vmem:[#allocation5 + $0x644] ss:$16 sps:$4 sm:$0xff]   ;;  %v3162_v23 = vld [vmem:[#allocation5 + $0x64c] ss:$16 sps:$4 sm:$0xff]  }
  0xd8   :  { %1725 = vmatpush1.bf16.msra.mxu0 %v3067_v24  ;;  %1889 = vmatpush1.bf16.msra.mxu1 %v3070_v25  ;;  %v3157_v24 = vld [vmem:[#allocation5 + $0x640] ss:$16 sps:$4 sm:$0xff]   ;;  %v3160_v25 = vld [vmem:[#allocation5 + $0x648] ss:$16 sps:$4 sm:$0xff]  }
  0xd9   :  { %1726 = vmatprep.subr.bf16.mxu0 %v3075_v26  ;;  %1890 = vmatprep.subr.bf16.mxu1 %v3078_v27  ;;  %v3165_v26 = vld [vmem:[#allocation5 + $0x664] ss:$16 sps:$4 sm:$0xff]   ;;  %v3168_v27 = vld [vmem:[#allocation5 + $0x66c] ss:$16 sps:$4 sm:$0xff]  }
  0xdc   :  { %1727 = vmatpush1.bf16.msra.mxu0 %v3073_v28  ;;  %1891 = vmatpush1.bf16.msra.mxu1 %v3076_v29  ;;  %v3163_v28 = vld [vmem:[#allocation5 + $0x660] ss:$16 sps:$4 sm:$0xff]   ;;  %v3166_v29 = vld [vmem:[#allocation5 + $0x668] ss:$16 sps:$4 sm:$0xff]  }
  0xdd   :  { %1728 = vmatprep.subr.bf16.mxu0 %v3081_v30  ;;  %1892 = vmatprep.subr.bf16.mxu1 %v3084_v31  ;;  %v3171_v30 = vld [vmem:[#allocation5 + $0x684] ss:$16 sps:$4 sm:$0xff]   ;;  %v3174_v31 = vld [vmem:[#allocation5 + $0x68c] ss:$16 sps:$4 sm:$0xff]  }
  0xe0   :  { %1729 = vmatpush1.bf16.msra.mxu0 %v3079_v32  ;;  %1893 = vmatpush1.bf16.msra.mxu1 %v3082_v33  ;;  %v3169_v32 = vld [vmem:[#allocation5 + $0x680] ss:$16 sps:$4 sm:$0xff]   ;;  %v3172_v33 = vld [vmem:[#allocation5 + $0x688] ss:$16 sps:$4 sm:$0xff]  }
  0xe1   :  { %1730 = vmatprep.subr.bf16.mxu0 %v3087_v34  ;;  %1894 = vmatprep.subr.bf16.mxu1 %v3090_v35  ;;  %v3177_v34 = vld [vmem:[#allocation5 + $0x6a4] ss:$16 sps:$4 sm:$0xff]   ;;  %v3180_v35 = vld [vmem:[#allocation5 + $0x6ac] ss:$16 sps:$4 sm:$0xff]  }
  0xe4   :  { %1731 = vmatpush1.bf16.msra.mxu0 %v3085_v36  ;;  %1895 = vmatpush1.bf16.msra.mxu1 %v3088_v37  ;;  %v3175_v36 = vld [vmem:[#allocation5 + $0x6a0] ss:$16 sps:$4 sm:$0xff]   ;;  %v3178_v37 = vld [vmem:[#allocation5 + $0x6a8] ss:$16 sps:$4 sm:$0xff]  }
  0xe5   :  { %1732 = vmatprep.subr.bf16.mxu0 %v3093_v38  ;;  %1896 = vmatprep.subr.bf16.mxu1 %v3096_v39  ;;  %v3183_v38 = vld [vmem:[#allocation5 + $0x6c4] ss:$16 sps:$4 sm:$0xff]   ;;  %v3186_v39 = vld [vmem:[#allocation5 + $0x6cc] ss:$16 sps:$4 sm:$0xff]  }
  0xe8   :  { %1733 = vmatpush1.bf16.msra.mxu0 %v3091_v40  ;;  %1897 = vmatpush1.bf16.msra.mxu1 %v3094_v41  ;;  %v3181_v40 = vld [vmem:[#allocation5 + $0x6c0] ss:$16 sps:$4 sm:$0xff]   ;;  %v3184_v41 = vld [vmem:[#allocation5 + $0x6c8] ss:$16 sps:$4 sm:$0xff]  }
  0xe9   :  { %1734 = vmatprep.subr.bf16.mxu0 %v3099_v42  ;;  %1898 = vmatprep.subr.bf16.mxu1 %v3102_v43  ;;  %v3189_v42 = vld [vmem:[#allocation5 + $0x6e4] ss:$16 sps:$4 sm:$0xff]   ;;  %v3192_v43 = vld [vmem:[#allocation5 + $0x6ec] ss:$16 sps:$4 sm:$0xff]  }
  0xec   :  { %1735 = vmatpush1.bf16.msra.mxu0 %v3097_v44  ;;  %1899 = vmatpush1.bf16.msra.mxu1 %v3100_v45  ;;  %v3187_v44 = vld [vmem:[#allocation5 + $0x6e0] ss:$16 sps:$4 sm:$0xff]   ;;  %v3190_v45 = vld [vmem:[#allocation5 + $0x6e8] ss:$16 sps:$4 sm:$0xff]  }
  0xed   :  { %1736 = vmatprep.subr.bf16.mxu0 %v3105_v46  ;;  %1900 = vmatprep.subr.bf16.mxu1 %v3108_v47  ;;  %v3195_v46 = vld [vmem:[#allocation5 + $0x704] ss:$16 sps:$4 sm:$0xff]   ;;  %v3198_v47 = vld [vmem:[#allocation5 + $0x70c] ss:$16 sps:$4 sm:$0xff]  }
  0xf0   :  { %1737 = vmatpush1.bf16.msra.mxu0 %v3103_v48  ;;  %1901 = vmatpush1.bf16.msra.mxu1 %v3106_v49  ;;  %v3193_v48 = vld [vmem:[#allocation5 + $0x700] ss:$16 sps:$4 sm:$0xff]   ;;  %v3196_v49 = vld [vmem:[#allocation5 + $0x708] ss:$16 sps:$4 sm:$0xff]  }
  0xf1   :  { %1738 = vmatprep.subr.bf16.mxu0 %v3111_v50  ;;  %1902 = vmatprep.subr.bf16.mxu1 %v3114_v51  ;;  %v3201_v50 = vld [vmem:[#allocation5 + $0x724] ss:$16 sps:$4 sm:$0xff]   ;;  %v3204_v51 = vld [vmem:[#allocation5 + $0x72c] ss:$16 sps:$4 sm:$0xff]  }
  0xf4   :  { %1739 = vmatpush1.bf16.msra.mxu0 %v3109_v52  ;;  %1903 = vmatpush1.bf16.msra.mxu1 %v3112_v53  ;;  %v3199_v52 = vld [vmem:[#allocation5 + $0x720] ss:$16 sps:$4 sm:$0xff]   ;;  %v3202_v53 = vld [vmem:[#allocation5 + $0x728] ss:$16 sps:$4 sm:$0xff]  }
  0xf5   :  { %1740 = vmatprep.subr.bf16.mxu0 %v3117_v54  ;;  %1904 = vmatprep.subr.bf16.mxu1 %v3120_v55  ;;  %v3207_v54 = vld [vmem:[#allocation5 + $0x744] ss:$16 sps:$4 sm:$0xff]   ;;  %v3210_v55 = vld [vmem:[#allocation5 + $0x74c] ss:$16 sps:$4 sm:$0xff]  }
  0xf8   :  { %1741 = vmatpush1.bf16.msra.mxu0 %v3115_v56  ;;  %1905 = vmatpush1.bf16.msra.mxu1 %v3118_v57  ;;  %v3205_v56 = vld [vmem:[#allocation5 + $0x740] ss:$16 sps:$4 sm:$0xff]   ;;  %v3208_v57 = vld [vmem:[#allocation5 + $0x748] ss:$16 sps:$4 sm:$0xff]  }
  0xf9   :  { %1742 = vmatprep.subr.bf16.mxu0 %v3123_v58  ;;  %1906 = vmatprep.subr.bf16.mxu1 %v3126_v59  ;;  %v3213_v58 = vld [vmem:[#allocation5 + $0x764] ss:$16 sps:$4 sm:$0xff]   ;;  %v3216_v59 = vld [vmem:[#allocation5 + $0x76c] ss:$16 sps:$4 sm:$0xff]  }
  0xfc   :  { %1743 = vmatpush1.bf16.msra.mxu0 %v3121_v60  ;;  %1907 = vmatpush1.bf16.msra.mxu1 %v3124_v61  ;;  %v3211_v60 = vld [vmem:[#allocation5 + $0x760] ss:$16 sps:$4 sm:$0xff]   ;;  %v3214_v61 = vld [vmem:[#allocation5 + $0x768] ss:$16 sps:$4 sm:$0xff]  }
  0xfd   :  { %1744 = vmatprep.subr.bf16.mxu0 %v3129_v62  ;;  %1908 = vmatprep.subr.bf16.mxu1 %v3132_v63  ;;  %v3219_v62 = vld [vmem:[#allocation5 + $0x784] ss:$16 sps:$4 sm:$0xff]   ;;  %v3222_v63 = vld [vmem:[#allocation5 + $0x78c] ss:$16 sps:$4 sm:$0xff]  }
 0x100   :  { %1745 = vmatpush1.bf16.msra.mxu0 %v3127_v0  ;;  %1909 = vmatpush1.bf16.msra.mxu1 %v3130_v1  ;;  %v3217_v0 = vld [vmem:[#allocation5 + $0x780] ss:$16 sps:$4 sm:$0xff]   ;;  %v3220_v1 = vld [vmem:[#allocation5 + $0x788] ss:$16 sps:$4 sm:$0xff]  }
 0x101   :  { %1746 = vmatprep.subr.bf16.mxu0 %v3135_v2  ;;  %1910 = vmatprep.subr.bf16.mxu1 %v3138_v3  ;;  %v3225_v2 = vld [vmem:[#allocation5 + $0x7a4] ss:$16 sps:$4 sm:$0xff]   ;;  %v3228_v3 = vld [vmem:[#allocation5 + $0x7ac] ss:$16 sps:$4 sm:$0xff]  }
 0x104   :  { %1747 = vmatpush1.bf16.msra.mxu0 %v3133_v4  ;;  %1911 = vmatpush1.bf16.msra.mxu1 %v3136_v5  ;;  %v345_v4 = vld [vmem:[#allocation5 + $0x7c0] sm:$0xff]  ;;  %v346_v5 = vld [vmem:[#allocation5 + $0x7c8] sm:$0xff] }
 0x105   :  { %1748 = vmatprep.subr.bf16.mxu0 %v3141_v6  ;;  %1912 = vmatprep.subr.bf16.mxu1 %v3144_v7  ;;  %v3223_v6 = vld [vmem:[#allocation5 + $0x7a0] ss:$16 sps:$4 sm:$0xff]   ;;  %v3226_v7 = vld [vmem:[#allocation5 + $0x7a8] ss:$16 sps:$4 sm:$0xff]   ;;  %v2697_v11 = vcombine.low %v346_v5, %v346_v5 }
 0x108   :  { %1749 = vmatpush1.bf16.msra.mxu0 %v3139_v8  ;;  %1913 = vmatpush1.bf16.msra.mxu1 %v3142_v9  ;;  %v2696_v8 = vcombine.high %v345_v4, %v345_v4  ;;  %v2698_v9 = vcombine.high %v346_v5, %v346_v5 }
 0x109   :  { %1759 = vmatprep.subr.bf16.mxu0 %v3147_v10  ;;  %1923 = vmatprep.subr.bf16.mxu1 %v3150_v12  ;;  %v2695_v10 = vcombine.low %v345_v4, %v345_v4  ;;  %v87_v12 = vld [vmem:[#allocation2 + $0x30] sm:$0xff] }
 0x10b   :  { %1751 = vmatmul.mubr.bf16.vlgmr.msra.gmra.mrb[0].mxu0 %v93_v15  ;;  %1915 = vmatmul.mubr.bf16.vlgmr.msra.gmra.mrb[0].mxu1 %v93_v15  ;;  %v3233_v15 = vld [vmem:[#allocation7 + $0x40] sm:$0xff]  }
 0x10c   :  { %1760 = vmatpush1.bf16.msra.mxu0 %v3145_v13  ;;  %1924 = vmatpush1.bf16.msra.mxu1 %v3148_v14  ;;  %v1625_v13 = vsel %vm1623_vm1, %v2695_v10, 0  ;;  %v1631_v14 = vsel %vm1623_vm1, %v2697_v11, 0 }
 0x10d   :  { %1761 = vmatprep.subr.bf16.mxu0 %v3153_v17  ;;  %1925 = vmatprep.subr.bf16.mxu1 %v3156_v18  ;;  %v95_v17 = vpack.c.bf16 %v87_v12, %v87_v12  ;;  %v3235_v18 = vld [vmem:[#allocation7] sm:$0xff]  }
 0x10e   :  { %2700 = vmatprep.mubr.msk.bf16.mxu0 %vm1619_vm0, %v96_v21  ;;  %2702 = vmatprep.mubr.msk.bf16.mxu1 %vm1619_vm0, %v96_v21  ;;  %v3238_v21 = vld [vmem:[#allocation7 + $0xc8] sm:$0xff]  }
 0x110   :  { %1762 = vmatpush1.bf16.msra.mxu0 %v3151_v19  ;;  %1926 = vmatpush1.bf16.msra.mxu1 %v3154_v20  ;;  %v3236_v19 = vld [vmem:[#allocation7 + $0x80] sm:$0xff]   ;;  %v3237_v20 = vld [vmem:[#allocation7 + $0x48] sm:$0xff]  }
 0x111   :  { %1763 = vmatprep.subr.bf16.mxu0 %v3159_v22  ;;  %1927 = vmatprep.subr.bf16.mxu1 %v3162_v23  ;;  %v3239_v22 = vld [vmem:[#allocation7 + $0x8] sm:$0xff]  }
 0x112   :  { %v3240_v23 = vld [vmem:[#allocation7 + $0x88] sm:$0xff]  }
 0x114   :  { %1764 = vmatpush1.bf16.msra.mxu0 %v3157_v24  ;;  %1928 = vmatpush1.bf16.msra.mxu1 %v3160_v25  ;;  %v3241_v24 = vld [vmem:[#allocation7 + $0x50] sm:$0xff]  }
 0x115   :  { %1765 = vmatprep.subr.bf16.mxu0 %v3165_v26  ;;  %1929 = vmatprep.subr.bf16.mxu1 %v3168_v27  ;;  %v3242_v25 = vld [vmem:[#allocation7 + $0xd0] sm:$0xff]  }
 0x116   :  { %v3243_v26 = vld [vmem:[#allocation7 + $0x10] sm:$0xff]  }
 0x117   :  { %v3244_v27 = vld [vmem:[#allocation7 + $0x90] sm:$0xff]  }
 0x118   :  { %1766 = vmatpush1.bf16.msra.mxu0 %v3163_v28  ;;  %1930 = vmatpush1.bf16.msra.mxu1 %v3166_v29  ;;  %v3245_v28 = vld [vmem:[#allocation7 + $0x58] sm:$0xff]  }
 0x119   :  { %1767 = vmatprep.subr.bf16.mxu0 %v3171_v30  ;;  %1931 = vmatprep.subr.bf16.mxu1 %v3174_v31  ;;  %v3246_v29 = vld [vmem:[#allocation7 + $0xd8] sm:$0xff]  }
 0x11a   :  { %v3247_v30 = vld [vmem:[#allocation7 + $0x18] sm:$0xff]  }
 0x11b   :  { %v3248_v31 = vld [vmem:[#allocation7 + $0x98] sm:$0xff]  }
 0x11c   :  { %1768 = vmatpush1.bf16.msra.mxu0 %v3169_v32  ;;  %1932 = vmatpush1.bf16.msra.mxu1 %v3172_v33  ;;  %v3249_v32 = vld [vmem:[#allocation7 + $0x60] sm:$0xff]  }
 0x11d   :  { %1769 = vmatprep.subr.bf16.mxu0 %v3177_v34  ;;  %1933 = vmatprep.subr.bf16.mxu1 %v3180_v35  ;;  %v3250_v33 = vld [vmem:[#allocation7 + $0xe0] sm:$0xff]  }
 0x11e   :  { %v3251_v34 = vld [vmem:[#allocation7 + $0x20] sm:$0xff]  }
 0x11f   :  { %v3252_v35 = vld [vmem:[#allocation7 + $0xa0] sm:$0xff]  }
 0x120   :  { %1770 = vmatpush1.bf16.msra.mxu0 %v3175_v36  ;;  %1934 = vmatpush1.bf16.msra.mxu1 %v3178_v37  ;;  %v3253_v36 = vld [vmem:[#allocation7 + $0x68] sm:$0xff]  }
 0x121   :  { %1771 = vmatprep.subr.bf16.mxu0 %v3183_v38  ;;  %1935 = vmatprep.subr.bf16.mxu1 %v3186_v39  ;;  %v3254_v37 = vld [vmem:[#allocation7 + $0xe8] sm:$0xff]  }
 0x122   :  { %v3255_v38 = vld [vmem:[#allocation7 + $0x28] sm:$0xff]  }
 0x123   :  { %v3256_v39 = vld [vmem:[#allocation7 + $0xa8] sm:$0xff]  }
 0x124   :  { %1772 = vmatpush1.bf16.msra.mxu0 %v3181_v40  ;;  %1936 = vmatpush1.bf16.msra.mxu1 %v3184_v41  ;;  %v3257_v40 = vld [vmem:[#allocation7 + $0x70] sm:$0xff]  }
 0x125   :  { %1773 = vmatprep.subr.bf16.mxu0 %v3189_v42  ;;  %1937 = vmatprep.subr.bf16.mxu1 %v3192_v43  ;;  %v3258_v41 = vld [vmem:[#allocation7 + $0xf0] sm:$0xff]  }
 0x126   :  { %v3259_v42 = vld [vmem:[#allocation7 + $0x30] sm:$0xff]  }
 0x127   :  { %v3260_v43 = vld [vmem:[#allocation7 + $0xb0] sm:$0xff]  }
 0x128   :  { %1774 = vmatpush1.bf16.msra.mxu0 %v3187_v44  ;;  %1938 = vmatpush1.bf16.msra.mxu1 %v3190_v45  ;;  %v3261_v44 = vld [vmem:[#allocation7 + $0x78] sm:$0xff]  }
 0x129   :  { %1775 = vmatprep.subr.bf16.mxu0 %v3195_v46  ;;  %1939 = vmatprep.subr.bf16.mxu1 %v3198_v47  ;;  %v3262_v45 = vld [vmem:[#allocation7 + $0xf8] sm:$0xff]  }
 0x12a   :  { %v3263_v46 = vld [vmem:[#allocation7 + $0x38] sm:$0xff]  }
 0x12b   :  { %v3264_v47 = vld [vmem:[#allocation7 + $0xb8] sm:$0xff]  }
 0x12c   :  { %1776 = vmatpush1.bf16.msra.mxu0 %v3193_v48  ;;  %1940 = vmatpush1.bf16.msra.mxu1 %v3196_v49  ;;  %v3399_v48 = vmov 0.0   ;;  %v349_v49 = vlaneseq }
 0x12d   :  { %1777 = vmatprep.subr.bf16.mxu0 %v3201_v50  ;;  %1941 = vmatprep.subr.bf16.mxu1 %v3204_v51 }
 0x12e   :  { %v350_v50 = vshrl.u32 %v349_v49, 7 }
 0x130   :  { %1778 = vmatpush1.bf16.msra.mxu0 %v3199_v52  ;;  %1942 = vmatpush1.bf16.msra.mxu1 %v3202_v53  ;;  %v351_v51 = vsub.s32 0, %v350_v50  ;;  %v359_v52 = vsub.s32 2, %v350_v50  ;;  %v347_v53 = vld [vmem:[%s3515_s2] sm:$0xf] }
 0x131   :  { %1779 = vmatprep.subr.bf16.mxu0 %v3207_v54  ;;  %1943 = vmatprep.subr.bf16.mxu1 %v3210_v55  ;;  %v355_v54 = vsub.s32 1, %v350_v50  ;;  %v363_v55 = vsub.s32 3, %v350_v50 }
 0x134   :  { %1780 = vmatpush1.bf16.msra.mxu0 %v3205_v56  ;;  %1944 = vmatpush1.bf16.msra.mxu1 %v3208_v57  ;;  %v352_v56 = vrot.slane %v347_v53, %v351_v51  ;;  %v360_v57 = vrot.slane %v347_v53, %v359_v52 }
 0x135   :  { %1781 = vmatprep.subr.bf16.mxu0 %v3213_v58  ;;  %1945 = vmatprep.subr.bf16.mxu1 %v3216_v59  ;;  %v356_v58 = vrot.slane %v347_v53, %v355_v54  ;;  %v364_v59 = vrot.slane %v347_v53, %v363_v55 }
 0x138   :  { %1782 = vmatpush1.bf16.msra.mxu0 %v3211_v60  ;;  %1946 = vmatpush1.bf16.msra.mxu1 %v3214_v61 }
 0x139   :  { %1783 = vmatprep.subr.bf16.mxu0 %v3219_v62  ;;  %1947 = vmatprep.subr.bf16.mxu1 %v3222_v63 }
 0x13c   :  { %1784 = vmatpush1.bf16.msra.mxu0 %v3217_v0  ;;  %1948 = vmatpush1.bf16.msra.mxu1 %v3220_v1 }
 0x13d   :  { %1785 = vmatprep.subr.bf16.mxu0 %v3225_v2  ;;  %1949 = vmatprep.subr.bf16.mxu1 %v3228_v3 }
 0x140   :  { %1786 = vmatpush1.bf16.msra.mxu0 %v3223_v6  ;;  %1950 = vmatpush1.bf16.msra.mxu1 %v3226_v7 }
 0x141   :  { %2699 = vmatprep.subr.msk.bf16.mxu0 %vm1623_vm1, %v2696_v8  ;;  %2701 = vmatprep.subr.msk.bf16.mxu1 %vm1623_vm1, %v2698_v9 }
 0x144   :  { %1788 = vmatpush1.bf16.msra.mxu0 %v1625_v13  ;;  %1952 = vmatpush1.bf16.msra.mxu1 %v1631_v14  ;;  %v3265_v14 = vld [vmem:[#allocation8] sm:$0xff]  }
 0x145   :  { %2745 = vmatprep.subr.bf16.mxu0 %v3233_v15  ;;  %2767 = vmatprep.subr.bf16.mxu1 %v3234_v16 }
 0x147   :  { %1792 = vmatmul.mubr.bf16.vlgmr.msra.gmra.mrb[0].mxu0 %v95_v17  ;;  %1956 = vmatmul.mubr.bf16.vlgmr.msra.gmra.mrb[0].mxu1 %v95_v17  ;;  %v3266_v17 = vld [vmem:[#allocation8 + $0x8] sm:$0xff]  }
 0x148   :  { %2746 = vmatpush3.bf16.msra.mxu0 %v3235_v18  ;;  %2768 = vmatpush3.bf16.msra.mxu1 %v3236_v19  ;;  %v3267_v18 = vld [vmem:[#allocation8 + $0x10] sm:$0xff]   ;;  %v3268_v19 = vld [vmem:[#allocation8 + $0x18] sm:$0xff]  }
 0x149   :  { %2747 = vmatprep.subr.bf16.mxu0 %v3237_v20  ;;  %2769 = vmatprep.subr.bf16.mxu1 %v3238_v21  ;;  %v3269_v20 = vld [vmem:[#allocation8 + $0x20] sm:$0xff]   ;;  %v3270_v21 = vld [vmem:[#allocation8 + $0x28] sm:$0xff]  }
 0x14c   :  { %2748 = vmatpush3.bf16.msra.mxu0 %v3239_v22  ;;  %2770 = vmatpush3.bf16.msra.mxu1 %v3240_v23  ;;  %v3271_v22 = vld [vmem:[#allocation8 + $0x30] sm:$0xff]   ;;  %v3272_v23 = vld [vmem:[#allocation8 + $0x38] sm:$0xff]  }
 0x14d   :  { %2749 = vmatprep.subr.bf16.mxu0 %v3241_v24  ;;  %2771 = vmatprep.subr.bf16.mxu1 %v3242_v25 }
 0x150   :  { %2750 = vmatpush3.bf16.msra.mxu0 %v3243_v26  ;;  %2772 = vmatpush3.bf16.msra.mxu1 %v3244_v27  ;;  %v2703_v26 = vld [vmem:[%s3517_s4] ss:$0 sm:$0xff]  ;;  %s2436_s4 = sshll.u32 %s3401_s30, 4  ;;  %s2437_s4 = int_to_ptr.vmem [resolvable:$true] %s2436_s4 }
 0x151   :  { %2751 = vmatprep.subr.bf16.mxu0 %v3245_v28  ;;  %2773 = vmatprep.subr.bf16.mxu1 %v3246_v29  ;;  %s3361_s8 = scalar_lea.vmem %s2437_s4, 64  ;;  %p3366_p5 = scmp.lt.s32.totalorder %s2437_s4, %s2437_s4 }
 0x152   :  { %p3362_p4 = scmp.ne.s32.totalorder %s2437_s4, %s3361_s8  ;;  %p3367_p6 = scmp.lt.s32.totalorder %s3361_s8, %s3361_s8 }
 0x154   :  { %2752 = vmatpush3.bf16.msra.mxu0 %v3247_v30  ;;  %2774 = vmatpush3.bf16.msra.mxu1 %v3248_v31  ;;  %p3368_p7 = por %p3367_p6, %p3366_p5 }
 0x155   :  { %2753 = vmatprep.subr.bf16.mxu0 %v3249_v32  ;;  %2775 = vmatprep.subr.bf16.mxu1 %v3250_v33 }
 0x156   :  { %p3369_p8 = pnand %p3368_p7, %p3362_p4 }
 0x158   :  { %2754 = vmatpush3.bf16.msra.mxu0 %v3251_v34  ;;  %2776 = vmatpush3.bf16.msra.mxu1 %v3252_v35 }
 0x159   :  { %2755 = vmatprep.subr.bf16.mxu0 %v3253_v36  ;;  %2777 = vmatprep.subr.bf16.mxu1 %v3254_v37 }
 0x15c   :  { %2756 = vmatpush3.bf16.msra.mxu0 %v3255_v38  ;;  %2778 = vmatpush3.bf16.msra.mxu1 %v3256_v39  ;;  %v2736_v39 = vld [vmem:[%s3519_s6] ss:$0 sm:$0xff] }
 0x15d   :  { %2757 = vmatprep.subr.bf16.mxu0 %v3257_v40  ;;  %2779 = vmatprep.subr.bf16.mxu1 %v3258_v41 }
 0x160   :  { %2758 = vmatpush3.bf16.msra.mxu0 %v3259_v42  ;;  %2780 = vmatpush3.bf16.msra.mxu1 %v3260_v43 }
 0x161   :  { %2759 = vmatprep.subr.bf16.mxu0 %v3261_v44  ;;  %2781 = vmatprep.subr.bf16.mxu1 %v3262_v45 }
 0x164   :  { %2760 = vmatpush3.bf16.msra.mxu0 %v3263_v46  ;;  %2782 = vmatpush3.bf16.msra.mxu1 %v3264_v47 }
 0x165   :  { %2798 = vmatprep.subr.bf16.mxu0 %v3399_v48 }
 0x21a   :  { %v1793_v60 = vpop.f32.mrb[0].mxu0  ;;  %v1957_v61 = vpop.f32.mrb[0].mxu1 }
 0x21b   :  { %v2818_v62 = vadd.f32 %v1793_v60, %v352_v56  ;;  %v2820_v63 = vadd.f32 %v1957_v61, %v360_v57  ;;  %v1795_v0 = vpop.f32.mrb[1].mxu0  ;;  %v1959_v1 = vpop.f32.mrb[1].mxu1 }
 0x21c   :  { %v2819_v2 = vadd.f32 %v1795_v0, %v356_v58  ;;  %v2821_v3 = vadd.f32 %v1959_v1, %v364_v59  ;;  %v1797_v4 = vpop.f32.mrb[2].mxu0  ;;  %v1961_v5 = vpop.f32.mrb[2].mxu1 }
 0x21d   :  { %v1964_v6 = vmax.f32 %v2818_v62, 0.0  ;;  %v1966_v7 = vmax.f32 %v2820_v63, 0.0  ;;  %v1798_v8 = vpop.f32.mrb[3].mxu0  ;;  %v1962_v9 = vpop.f32.mrb[3].mxu1 }
 0x21e   :  { %v1965_v10 = vmax.f32 %v2819_v2, 0.0  ;;  %v1967_v11 = vmax.f32 %v2821_v3, 0.0 }
 0x21f   :  { %v1968_v15 = vpack.c.bf16 %v1964_v6, %v1964_v6  ;;  %v1970_v16 = vpack.c.bf16 %v1966_v7, %v1966_v7 }
 0x220   :  { %v1969_v12 = vpack.c.bf16 %v1965_v10, %v1965_v10  ;;  %v1971_v13 = vpack.c.bf16 %v1967_v11, %v1967_v11 }
 0x222   :  { %2267 = vmatprep.mubr.bf16.mxu0 %v1969_v12  ;;  %2307 = vmatprep.mubr.bf16.mxu1 %v1971_v13 }
 0x223   :  { %2268 = vmatmul.mubr.bf16.vlgmr.msra.gmra.mrb[4].mxu0 %v1968_v15  ;;  %2308 = vmatmul.mubr.bf16.vlgmr.msra.gmra.mrb[4].mxu1 %v1970_v16 }
 0x224   :  { %2799 = vmatpush3.bf16.msra.mxu0 %v3265_v14  ;;  %2814 = vmatprep.mubr.msk.bf16.mxu0 %vm3400_vm2, %v3399_v48 }
 0x225   :  { %2800 = vmatprep.subr.bf16.mxu0 %v3399_v48 }
 0x228   :  { %2801 = vmatpush3.bf16.msra.mxu0 %v3266_v17 }
 0x229   :  { %2802 = vmatprep.subr.bf16.mxu0 %v3399_v48 }
 0x22c   :  { %2803 = vmatpush3.bf16.msra.mxu0 %v3267_v18 }
 0x22d   :  { %2804 = vmatprep.subr.bf16.mxu0 %v3399_v48 }
 0x230   :  { %2805 = vmatpush3.bf16.msra.mxu0 %v3268_v19 }
 0x231   :  { %2806 = vmatprep.subr.bf16.mxu0 %v3399_v48 }
 0x234   :  { %2807 = vmatpush3.bf16.msra.mxu0 %v3269_v20 }
 0x235   :  { %2808 = vmatprep.subr.bf16.mxu0 %v3399_v48 }
 0x238   :  { %2809 = vmatpush3.bf16.msra.mxu0 %v3270_v21 }
 0x239   :  { %2810 = vmatprep.subr.bf16.mxu0 %v3399_v48 }
 0x23c   :  { %2811 = vmatpush3.bf16.msra.mxu0 %v3271_v22 }
 0x23d   :  { %2812 = vmatprep.subr.bf16.mxu0 %v3399_v48 }
 0x240   :  { %2813 = vmatpush3.bf16.msra.mxu0 %v3272_v23 }
 0x2f6   :  { %v2761_v24 = vpop.f32.mrb[4].mxu0  ;;  %v2783_v25 = vpop.f32.mrb[4].mxu1 }
 0x2f7   :  { %v2762_v27 = vpop.f32.mrb[5].mxu0  ;;  %v2784_v28 = vpop.f32.mrb[5].mxu1 }
 0x2f8   :  { %v2763_v29 = vadd.f32 %v2762_v27, %v2761_v24  ;;  %v2785_v30 = vadd.f32 %v2784_v28, %v2783_v25  ;;  %v2764_v31 = vpop.f32.mrb[6].mxu0  ;;  %v2786_v32 = vpop.f32.mrb[6].mxu1 }
 0x2f9   :  { %v2765_v33 = vpop.f32.mrb[7].mxu0  ;;  %v2787_v34 = vpop.f32.mrb[7].mxu1 }
 0x2fa   :  { %v2270_v35 = vadd.f32 %v2763_v29, %v2703_v26 }
 0x2fc   :  { %v2310_v36 = vadd.f32 %v2785_v30, %v2270_v35 }
 0x2fe   :  { %v2315_v37 = vmax.f32 %v2310_v36, 0.0 }
 0x300   :  { %v2316_v38 = vpack.c.bf16 %v2315_v37, %v2315_v37 }
 0x302   :  { %2815 = vmatmul.mubr.bf16.vlgmr.msra.gmra.mrb[8].mxu0 %v2316_v38 }
 0x3d5   :  { %v2422_v40 = vpop.f32.mrb[8].mxu0 }
 0x3d6   :  { %v2423_v41 = vadd.f32 %v2736_v39, %v2422_v40  ;;  %v2816_v42 = vpop.f32.mrb[9].mxu0 }
 0x3d7   :  { %v2425_v43 = vpop.f32.mrb[10].mxu0 }
 0x3d8   :  { %v2428_v44 = vpack.c.bf16 %v2423_v41, %v2423_v41  ;;  %v2817_v45 = vpop.f32.mrb[11].mxu0 }
 0x3da   :  { %2429 = vst [vmem:[#allocation10] sm:$0xf] %v2428_v44 }
 0x3db   :  { %3372 = shalt.err (!%p3369_p8)
}
 0x3dc   :  { %s3373_s6 = scalar_lea.hbm %s3520_s7, 64 }
 0x3dd   :  { %p3374_p9 = scmp.ne.s32.totalorder %s3520_s7, %s3373_s6  ;;  %p3377_p10 = scmp.lt.u32.totalorder %s3373_s6, %s3520_s7 }
 0x3df   :  { %p3379_p11 = pnand %p3377_p10, %p3374_p9 }
 0x3e1   :  { %3382 = shalt.err (!%p3379_p11)
}
 0x3e2   :  { %2439 = dma.vmem_to_hbm [thread:$0]  %s2437_s4, 64, %s3520_s7, [#allocation4]  }
 0x3e3   :  { %3389 = dma.done.wait [#allocation4], 64  }
 0x3e4   :  { %3390 = vsyncadd [#allocation4], 4294967232 }
 0x3e5   :  { %2443 = vsyncpa [#allocation3], 1 }
 0x3e6   :  { %2444 = vsyncpa [#allocation6], 1 }
 0x3e7   :  { %2445 = vsyncpa [#allocation9], 1 }
 0x3e8   :  { %2446 = vsyncpa [#allocation4], 1 }

</bundles_post_ra>
